<compile_context>
chip_gen: v7x
topology: tpu7x:2x2x1
jax: 0.10.0
libtpu: 0.0.40
codegen_flags: <defaults>
</compile_context>

<pallas_src>
import functools

import jax
import jax.numpy as jnp
from jax.experimental import pallas as pl
from jax.experimental.pallas import tpu as pltpu


def _round_up(v, m):
    return (v + m - 1) // m * m


def _residual_block_kernel(x_ref, mask_ref, w1_ref, b1_ref, w2_ref, b2_ref,
                           out_ref, col_ref, hpad_ref,
                           *, cpad, offsets, npad, slack):
    """Refs:
       x_ref:    (C_pad, n_pad + 2*slack) channel-major, zero-padded, flat input
       mask_ref: (1, n_pad)               1.0 at interior pixels, 0.0 at halo/tail
       w*_ref:   (C_pad, K*K*C_pad)       flattened conv weights
       b*_ref:   (C_pad, 1)               conv biases
       out_ref:  (C_pad, n_pad)           flat output (halo/tail discarded outside)
       col_ref:  (K*K*C_pad, n_pad)       im2col scratch (reused by both convs)
       hpad_ref: (C_pad, n_pad + 2*slack) zero-padded intermediate scratch
    """
    # ---- conv1: im2col via static lane slices, then one MXU matmul ----------
    for k, off in enumerate(offsets):
        col_ref[k * cpad:(k + 1) * cpad, :] = x_ref[:, slack + off: slack + off + npad]
    h = jnp.dot(w1_ref[...], col_ref[...], preferred_element_type=jnp.float32)
    h = jnp.maximum(h + b1_ref[...], 0.0)                     # bias + ReLU, (C_pad, n_pad)

    # ---- re-apply zero padding to the intermediate (no concatenates) --------
    hpad_ref[...] = jnp.zeros(hpad_ref.shape, hpad_ref.dtype)
    hpad_ref[:, slack:slack + npad] = h * mask_ref[...]        # halo/tail pixels -> 0

    # ---- conv2: same im2col + one matmul ------------------------------------
    for k, off in enumerate(offsets):
        col_ref[k * cpad:(k + 1) * cpad, :] = hpad_ref[:, slack + off: slack + off + npad]
    y = jnp.dot(w2_ref[...], col_ref[...], preferred_element_type=jnp.float32)
    y = y + b2_ref[...]

    # ---- residual add (original x in the same flat layout) ------------------
    out_ref[...] = y + x_ref[:, slack:slack + npad]


def residual_block_forward(x, w1, b1, w2, b2):
    """x: (B, C, H, W) NCHW; w*: (Cout, Cin, K, K); b*: (Cout,). Returns NCHW."""
    B, C, H, W = x.shape
    Cout, Cin, K, K2 = w1.shape
    assert K == K2 and K % 2 == 1, "odd square kernels only"
    assert Cin == C and Cout == C, "residual add requires in_channels == out_channels"

    pad = K // 2
    Hp, Wp = H + 2 * pad, W + 2 * pad
    n = B * Hp * Wp                           # flat "pixel" axis (batch folded in)
    n_pad = _round_up(n, 128)                 # lane-dense minor dim
    c_pad = _round_up(max(C, 8), 8)           # sublane-aligned channel dim
    slack = pad * Wp + pad                    # max |tap offset| along the flat axis
    taps = K * K
    offsets = tuple((dy - pad) * Wp + (dx - pad)
                    for dy in range(K) for dx in range(K))

    f32 = jnp.float32
    # Channel-major, zero-padded, flattened, with `slack` zeros on both ends
    # (plus the n->n_pad tail) so every tap of both convs is an in-bounds
    # static lane slice of an all-zero-outside array.
    xc = jnp.transpose(x, (1, 0, 2, 3)).astype(f32)                  # (C, B, H, W)
    xpad = jnp.pad(xc, ((0, 0), (0, 0), (pad, pad), (pad, pad)))     # (C, B, Hp, Wp)
    xflat = jnp.pad(xpad.reshape(C, n),
                    ((0, c_pad - C), (slack, slack + (n_pad - n))))  # (C_pad, n_pad+2*slack)

    mask = jnp.pad(jnp.ones((B, H, W), f32),
                   ((0, 0), (pad, pad), (pad, pad))).reshape(1, n)
    mask = jnp.pad(mask, ((0, 0), (0, n_pad - n)))                   # (1, n_pad)

    # Pad channels, then flatten OIHW -> (Cout_pad, (dy*K+dx)*Cin_pad + ci)
    # to match the im2col row order.
    def _flatten_w(w):
        wp = jnp.pad(w.astype(f32), ((0, c_pad - C), (0, c_pad - C), (0, 0), (0, 0)))
        return jnp.transpose(wp, (0, 2, 3, 1)).reshape(c_pad, taps * c_pad)

    w1f = _flatten_w(w1)
    w2f = _flatten_w(w2)
    b1c = jnp.pad(b1.astype(f32), (0, c_pad - C)).reshape(c_pad, 1)
    b2c = jnp.pad(b2.astype(f32), (0, c_pad - C)).reshape(c_pad, 1)

    kernel = functools.partial(_residual_block_kernel,
                               cpad=c_pad, offsets=offsets, npad=n_pad, slack=slack)

    y_flat = pl.pallas_call(
        kernel,
        out_shape=jax.ShapeDtypeStruct((c_pad, n_pad), f32),
        scratch_shapes=[pltpu.VMEM((taps * c_pad, n_pad), f32),        # im2col matrix
                        pltpu.VMEM((c_pad, n_pad + 2 * slack), f32)],  # padded intermediate
    )(xflat, mask, w1f, b1c, w2f, b2c)

    # (C_pad, n_pad) -> valid (C, n) -> (C, B, Hp, Wp) -> drop halo -> NCHW.
    y = y_flat[:C, :n].reshape(C, B, Hp, Wp)[:, :, pad:Hp - pad, pad:Wp - pad]
    return jnp.transpose(y, (1, 0, 2, 3))


def _reference(x, w1, b1, w2, b2):
    dn = ("NCHW", "OIHW", "NCHW")
    h = jax.lax.conv_general_dilated(x, w1, (1, 1), "SAME", dimension_numbers=dn,
                                     precision=jax.lax.Precision.HIGHEST)
    h = jnp.maximum(h + b1[None, :, None, None], 0.0)
    y = jax.lax.conv_general_dilated(h, w2, (1, 1), "SAME", dimension_numbers=dn,
                                     precision=jax.lax.Precision.HIGHEST)
    return y + b2[None, :, None, None] + x


if __name__ == "__main__":
    B, C, H, W, K = 2, 4, 16, 16, 3

    key = jax.random.PRNGKey(0)
    k1, k2, k3, k4, k5 = jax.random.split(key, 5)
    x = jax.random.normal(k1, (B, C, H, W), jnp.float32)
    w1 = jax.random.normal(k2, (C, C, K, K), jnp.float32) * 0.1
    b1 = jax.random.normal(k3, (C,), jnp.float32) * 0.1
    w2 = jax.random.normal(k4, (C, C, K, K), jnp.float32) * 0.1
    b2 = jax.random.normal(k5, (C,), jnp.float32) * 0.1

    out = residual_block_forward(x, w1, b1, w2, b2)
    jax.block_until_ready(out)
    assert out.shape == (B, C, H, W)

    # Correctness vs a plain-JAX reference (tolerance covers MXU matmul precision).
    ref = _reference(x, w1, b1, w2, b2)
    max_err = float(jnp.max(jnp.abs(out - ref)))
    assert max_err < 1e-2, f"mismatch vs reference: max abs err {max_err}"

    print("KERNEL_OK")
</pallas_src>

<mosaic_0001>
module attributes {stable_mosaic.version = 11 : i64} {
  func.func @_residual_block_kernel(%arg0: memref<8x806xf32, #tpu.memory_space<vmem>>, %arg1: memref<1x768xf32, #tpu.memory_space<vmem>>, %arg2: memref<8x72xf32, #tpu.memory_space<vmem>>, %arg3: memref<8x1xf32, #tpu.memory_space<vmem>>, %arg4: memref<8x72xf32, #tpu.memory_space<vmem>>, %arg5: memref<8x1xf32, #tpu.memory_space<vmem>>, %arg6: memref<8x768xf32, #tpu.memory_space<vmem>>, %arg7: memref<72x768xf32, #tpu.memory_space<vmem>>, %arg8: memref<8x806xf32, #tpu.memory_space<vmem>>) attributes {dimension_semantics = [], scalar_prefetch = 0 : i64, scratch_operands = 2 : i64, tpu.core_type = #tpu.core_type<tc>} {
    %c0 = arith.constant 0 : index
    %c0_0 = arith.constant 0 : index
    %0 = vector.load %arg0[%c0, %c0_0] : memref<8x806xf32, #tpu.memory_space<vmem>>, vector<8x768xf32>
    %c0_1 = arith.constant 0 : index
    %c0_2 = arith.constant 0 : index
    %1 = vector.load %arg7[%c0_1, %c0_2] : memref<72x768xf32, #tpu.memory_space<vmem>>, vector<8x768xf32>
    tpu.vector_store %arg7[%c0_1, %c0_2], %0 {strides = array<i32>} : memref<72x768xf32, #tpu.memory_space<vmem>>, vector<8x768xf32>,
    %c0_3 = arith.constant 0 : index
    %c1 = arith.constant 1 : index
    %2 = vector.load %arg0[%c0_3, %c1] : memref<8x806xf32, #tpu.memory_space<vmem>>, vector<8x768xf32>
    %c8 = arith.constant 8 : index
    %c0_4 = arith.constant 0 : index
    %3 = vector.load %arg7[%c8, %c0_4] : memref<72x768xf32, #tpu.memory_space<vmem>>, vector<8x768xf32>
    tpu.vector_store %arg7[%c8, %c0_4], %2 {strides = array<i32>} : memref<72x768xf32, #tpu.memory_space<vmem>>, vector<8x768xf32>,
    %c0_5 = arith.constant 0 : index
    %c2 = arith.constant 2 : index
    %4 = vector.load %arg0[%c0_5, %c2] : memref<8x806xf32, #tpu.memory_space<vmem>>, vector<8x768xf32>
    %c16 = arith.constant 16 : index
    %c0_6 = arith.constant 0 : index
    %5 = vector.load %arg7[%c16, %c0_6] : memref<72x768xf32, #tpu.memory_space<vmem>>, vector<8x768xf32>
    tpu.vector_store %arg7[%c16, %c0_6], %4 {strides = array<i32>} : memref<72x768xf32, #tpu.memory_space<vmem>>, vector<8x768xf32>,
    %c0_7 = arith.constant 0 : index
    %c18 = arith.constant 18 : index
    %6 = vector.load %arg0[%c0_7, %c18] : memref<8x806xf32, #tpu.memory_space<vmem>>, vector<8x768xf32>
    %c24 = arith.constant 24 : index
    %c0_8 = arith.constant 0 : index
    %7 = vector.load %arg7[%c24, %c0_8] : memref<72x768xf32, #tpu.memory_space<vmem>>, vector<8x768xf32>
    tpu.vector_store %arg7[%c24, %c0_8], %6 {strides = array<i32>} : memref<72x768xf32, #tpu.memory_space<vmem>>, vector<8x768xf32>,
    %c0_9 = arith.constant 0 : index
    %c19 = arith.constant 19 : index
    %8 = vector.load %arg0[%c0_9, %c19] : memref<8x806xf32, #tpu.memory_space<vmem>>, vector<8x768xf32>
    %c32 = arith.constant 32 : index
    %c0_10 = arith.constant 0 : index
    %9 = vector.load %arg7[%c32, %c0_10] : memref<72x768xf32, #tpu.memory_space<vmem>>, vector<8x768xf32>
    tpu.vector_store %arg7[%c32, %c0_10], %8 {strides = array<i32>} : memref<72x768xf32, #tpu.memory_space<vmem>>, vector<8x768xf32>,
    %c0_11 = arith.constant 0 : index
    %c20 = arith.constant 20 : index
    %10 = vector.load %arg0[%c0_11, %c20] : memref<8x806xf32, #tpu.memory_space<vmem>>, vector<8x768xf32>
    %c40 = arith.constant 40 : index
    %c0_12 = arith.constant 0 : index
    %11 = vector.load %arg7[%c40, %c0_12] : memref<72x768xf32, #tpu.memory_space<vmem>>, vector<8x768xf32>
    tpu.vector_store %arg7[%c40, %c0_12], %10 {strides = array<i32>} : memref<72x768xf32, #tpu.memory_space<vmem>>, vector<8x768xf32>,
    %c0_13 = arith.constant 0 : index
    %c36 = arith.constant 36 : index
    %12 = vector.load %arg0[%c0_13, %c36] : memref<8x806xf32, #tpu.memory_space<vmem>>, vector<8x768xf32>
    %c48 = arith.constant 48 : index
    %c0_14 = arith.constant 0 : index
    %13 = vector.load %arg7[%c48, %c0_14] : memref<72x768xf32, #tpu.memory_space<vmem>>, vector<8x768xf32>
    tpu.vector_store %arg7[%c48, %c0_14], %12 {strides = array<i32>} : memref<72x768xf32, #tpu.memory_space<vmem>>, vector<8x768xf32>,
    %c0_15 = arith.constant 0 : index
    %c37 = arith.constant 37 : index
    %14 = vector.load %arg0[%c0_15, %c37] : memref<8x806xf32, #tpu.memory_space<vmem>>, vector<8x768xf32>
    %c56 = arith.constant 56 : index
    %c0_16 = arith.constant 0 : index
    %15 = vector.load %arg7[%c56, %c0_16] : memref<72x768xf32, #tpu.memory_space<vmem>>, vector<8x768xf32>
    tpu.vector_store %arg7[%c56, %c0_16], %14 {strides = array<i32>} : memref<72x768xf32, #tpu.memory_space<vmem>>, vector<8x768xf32>,
    %c0_17 = arith.constant 0 : index
    %c38 = arith.constant 38 : index
    %16 = vector.load %arg0[%c0_17, %c38] : memref<8x806xf32, #tpu.memory_space<vmem>>, vector<8x768xf32>
    %c64 = arith.constant 64 : index
    %c0_18 = arith.constant 0 : index
    %17 = vector.load %arg7[%c64, %c0_18] : memref<72x768xf32, #tpu.memory_space<vmem>>, vector<8x768xf32>
    tpu.vector_store %arg7[%c64, %c0_18], %16 {strides = array<i32>} : memref<72x768xf32, #tpu.memory_space<vmem>>, vector<8x768xf32>,
    %c0_19 = arith.constant 0 : index
    %c0_20 = arith.constant 0 : index
    %18 = vector.load %arg2[%c0_19, %c0_20] : memref<8x72xf32, #tpu.memory_space<vmem>>, vector<8x72xf32>
    %c0_21 = arith.constant 0 : index
    %c0_22 = arith.constant 0 : index
    %19 = vector.load %arg7[%c0_21, %c0_22] : memref<72x768xf32, #tpu.memory_space<vmem>>, vector<72x768xf32>
    %cst = arith.constant dense<0.000000e+00> : vector<8x768xf32>
    %20 = tpu.matmul %18, %19, %cst {dimension_numbers = #tpu.dot_dimension_numbers<[1], [0], [0], [1], [0, 0, 1, 1], [], []>} : vector<8x72xf32>, vector<72x768xf32>, vector<8x768xf32> -> vector<8x768xf32>
    %c0_23 = arith.constant 0 : index
    %c0_24 = arith.constant 0 : index
    %21 = vector.load %arg3[%c0_23, %c0_24] : memref<8x1xf32, #tpu.memory_space<vmem>>, vector<8x1xf32>
    %22 = vector.broadcast %21 : vector<8x1xf32> to vector<8x768xf32>
    %23 = arith.addf %20, %22 : vector<8x768xf32>
    %cst_25 = arith.constant 0.000000e+00 : f32
    %24 = vector.broadcast %cst_25 : f32 to vector<8x768xf32>
    %25 = arith.maximumf %23, %24 : vector<8x768xf32>
    %cst_26 = arith.constant 0.000000e+00 : f32
    %26 = vector.broadcast %cst_26 : f32 to vector<8x806xf32>
    %c0_27 = arith.constant 0 : index
    %c0_28 = arith.constant 0 : index
    %27 = vector.load %arg8[%c0_27, %c0_28] : memref<8x806xf32, #tpu.memory_space<vmem>>, vector<8x806xf32>
    tpu.vector_store %arg8[%c0_27, %c0_28], %26 {strides = array<i32>} : memref<8x806xf32, #tpu.memory_space<vmem>>, vector<8x806xf32>,
    %c0_29 = arith.constant 0 : index
    %c0_30 = arith.constant 0 : index
    %28 = vector.load %arg1[%c0_29, %c0_30] : memref<1x768xf32, #tpu.memory_space<vmem>>, vector<1x768xf32>
    %29 = vector.broadcast %28 : vector<1x768xf32> to vector<8x768xf32>
    %30 = arith.mulf %25, %29 : vector<8x768xf32>
    %c0_31 = arith.constant 0 : index
    %c19_32 = arith.constant 19 : index
    %31 = vector.load %arg8[%c0_31, %c19_32] : memref<8x806xf32, #tpu.memory_space<vmem>>, vector<8x768xf32>
    tpu.vector_store %arg8[%c0_31, %c19_32], %30 {strides = array<i32>} : memref<8x806xf32, #tpu.memory_space<vmem>>, vector<8x768xf32>,
    %c0_33 = arith.constant 0 : index
    %c0_34 = arith.constant 0 : index
    %32 = vector.load %arg8[%c0_33, %c0_34] : memref<8x806xf32, #tpu.memory_space<vmem>>, vector<8x768xf32>
    %c0_35 = arith.constant 0 : index
    %c0_36 = arith.constant 0 : index
    %33 = vector.load %arg7[%c0_35, %c0_36] : memref<72x768xf32, #tpu.memory_space<vmem>>, vector<8x768xf32>
    tpu.vector_store %arg7[%c0_35, %c0_36], %32 {strides = array<i32>} : memref<72x768xf32, #tpu.memory_space<vmem>>, vector<8x768xf32>,
    %c0_37 = arith.constant 0 : index
    %c1_38 = arith.constant 1 : index
    %34 = vector.load %arg8[%c0_37, %c1_38] : memref<8x806xf32, #tpu.memory_space<vmem>>, vector<8x768xf32>
    %c8_39 = arith.constant 8 : index
    %c0_40 = arith.constant 0 : index
    %35 = vector.load %arg7[%c8_39, %c0_40] : memref<72x768xf32, #tpu.memory_space<vmem>>, vector<8x768xf32>
    tpu.vector_store %arg7[%c8_39, %c0_40], %34 {strides = array<i32>} : memref<72x768xf32, #tpu.memory_space<vmem>>, vector<8x768xf32>,
    %c0_41 = arith.constant 0 : index
    %c2_42 = arith.constant 2 : index
    %36 = vector.load %arg8[%c0_41, %c2_42] : memref<8x806xf32, #tpu.memory_space<vmem>>, vector<8x768xf32>
    %c16_43 = arith.constant 16 : index
    %c0_44 = arith.constant 0 : index
    %37 = vector.load %arg7[%c16_43, %c0_44] : memref<72x768xf32, #tpu.memory_space<vmem>>, vector<8x768xf32>
    tpu.vector_store %arg7[%c16_43, %c0_44], %36 {strides = array<i32>} : memref<72x768xf32, #tpu.memory_space<vmem>>, vector<8x768xf32>,
    %c0_45 = arith.constant 0 : index
    %c18_46 = arith.constant 18 : index
    %38 = vector.load %arg8[%c0_45, %c18_46] : memref<8x806xf32, #tpu.memory_space<vmem>>, vector<8x768xf32>
    %c24_47 = arith.constant 24 : index
    %c0_48 = arith.constant 0 : index
    %39 = vector.load %arg7[%c24_47, %c0_48] : memref<72x768xf32, #tpu.memory_space<vmem>>, vector<8x768xf32>
    tpu.vector_store %arg7[%c24_47, %c0_48], %38 {strides = array<i32>} : memref<72x768xf32, #tpu.memory_space<vmem>>, vector<8x768xf32>,
    %c0_49 = arith.constant 0 : index
    %c19_50 = arith.constant 19 : index
    %40 = vector.load %arg8[%c0_49, %c19_50] : memref<8x806xf32, #tpu.memory_space<vmem>>, vector<8x768xf32>
    %c32_51 = arith.constant 32 : index
    %c0_52 = arith.constant 0 : index
    %41 = vector.load %arg7[%c32_51, %c0_52] : memref<72x768xf32, #tpu.memory_space<vmem>>, vector<8x768xf32>
    tpu.vector_store %arg7[%c32_51, %c0_52], %40 {strides = array<i32>} : memref<72x768xf32, #tpu.memory_space<vmem>>, vector<8x768xf32>,
    %c0_53 = arith.constant 0 : index
    %c20_54 = arith.constant 20 : index
    %42 = vector.load %arg8[%c0_53, %c20_54] : memref<8x806xf32, #tpu.memory_space<vmem>>, vector<8x768xf32>
    %c40_55 = arith.constant 40 : index
    %c0_56 = arith.constant 0 : index
    %43 = vector.load %arg7[%c40_55, %c0_56] : memref<72x768xf32, #tpu.memory_space<vmem>>, vector<8x768xf32>
    tpu.vector_store %arg7[%c40_55, %c0_56], %42 {strides = array<i32>} : memref<72x768xf32, #tpu.memory_space<vmem>>, vector<8x768xf32>,
    %c0_57 = arith.constant 0 : index
    %c36_58 = arith.constant 36 : index
    %44 = vector.load %arg8[%c0_57, %c36_58] : memref<8x806xf32, #tpu.memory_space<vmem>>, vector<8x768xf32>
    %c48_59 = arith.constant 48 : index
    %c0_60 = arith.constant 0 : index
    %45 = vector.load %arg7[%c48_59, %c0_60] : memref<72x768xf32, #tpu.memory_space<vmem>>, vector<8x768xf32>
    tpu.vector_store %arg7[%c48_59, %c0_60], %44 {strides = array<i32>} : memref<72x768xf32, #tpu.memory_space<vmem>>, vector<8x768xf32>,
    %c0_61 = arith.constant 0 : index
    %c37_62 = arith.constant 37 : index
    %46 = vector.load %arg8[%c0_61, %c37_62] : memref<8x806xf32, #tpu.memory_space<vmem>>, vector<8x768xf32>
    %c56_63 = arith.constant 56 : index
    %c0_64 = arith.constant 0 : index
    %47 = vector.load %arg7[%c56_63, %c0_64] : memref<72x768xf32, #tpu.memory_space<vmem>>, vector<8x768xf32>
    tpu.vector_store %arg7[%c56_63, %c0_64], %46 {strides = array<i32>} : memref<72x768xf32, #tpu.memory_space<vmem>>, vector<8x768xf32>,
    %c0_65 = arith.constant 0 : index
    %c38_66 = arith.constant 38 : index
    %48 = vector.load %arg8[%c0_65, %c38_66] : memref<8x806xf32, #tpu.memory_space<vmem>>, vector<8x768xf32>
    %c64_67 = arith.constant 64 : index
    %c0_68 = arith.constant 0 : index
    %49 = vector.load %arg7[%c64_67, %c0_68] : memref<72x768xf32, #tpu.memory_space<vmem>>, vector<8x768xf32>
    tpu.vector_store %arg7[%c64_67, %c0_68], %48 {strides = array<i32>} : memref<72x768xf32, #tpu.memory_space<vmem>>, vector<8x768xf32>,
    %c0_69 = arith.constant 0 : index
    %c0_70 = arith.constant 0 : index
    %50 = vector.load %arg4[%c0_69, %c0_70] : memref<8x72xf32, #tpu.memory_space<vmem>>, vector<8x72xf32>
    %c0_71 = arith.constant 0 : index
    %c0_72 = arith.constant 0 : index
    %51 = vector.load %arg7[%c0_71, %c0_72] : memref<72x768xf32, #tpu.memory_space<vmem>>, vector<72x768xf32>
    %cst_73 = arith.constant dense<0.000000e+00> : vector<8x768xf32>
    %52 = tpu.matmul %50, %51, %cst_73 {dimension_numbers = #tpu.dot_dimension_numbers<[1], [0], [0], [1], [0, 0, 1, 1], [], []>} : vector<8x72xf32>, vector<72x768xf32>, vector<8x768xf32> -> vector<8x768xf32>
    %c0_74 = arith.constant 0 : index
    %c0_75 = arith.constant 0 : index
    %53 = vector.load %arg5[%c0_74, %c0_75] : memref<8x1xf32, #tpu.memory_space<vmem>>, vector<8x1xf32>
    %54 = vector.broadcast %53 : vector<8x1xf32> to vector<8x768xf32>
    %55 = arith.addf %52, %54 : vector<8x768xf32>
    %c0_76 = arith.constant 0 : index
    %c19_77 = arith.constant 19 : index
    %56 = vector.load %arg0[%c0_76, %c19_77] : memref<8x806xf32, #tpu.memory_space<vmem>>, vector<8x768xf32>
    %57 = arith.addf %55, %56 : vector<8x768xf32>
    %c0_78 = arith.constant 0 : index
    %c0_79 = arith.constant 0 : index
    %58 = vector.load %arg6[%c0_78, %c0_79] : memref<8x768xf32, #tpu.memory_space<vmem>>, vector<8x768xf32>
    tpu.vector_store %arg6[%c0_78, %c0_79], %57 {strides = array<i32>} : memref<8x768xf32, #tpu.memory_space<vmem>>, vector<8x768xf32>,
    return
  }
}

</mosaic_0001>

<bundles_post_ra>
// kernel: tpu_custom_call.1
= control target key start
LH: loop header
LB: loop body
LE: loop exit
PB: predicated region body
PF: predicated region fallthrough
CT: control target
= control target key end

     0   :  { %11 = vsyncpa [#allocation5], 0  ;;  %s2433_s0 = inlined_call_operand.hbm [shape: f32[8,806], index: 0, kind: input, shape index: {}]   ;;  %s2434_s1 = inlined_call_operand.hbm [shape: f32[1,768], index: 1, kind: input, shape index: {}]   ;;  %s2435_s2 = inlined_call_operand.vmem [shape: f32[8,72], index: 2, kind: input, shape index: {}]   ;;  %s2436_s3 = inlined_call_operand.vmem [shape: f32[8,1], index: 3, kind: input, shape index: {}]   ;;  %s2437_s4 = inlined_call_operand.vmem [shape: f32[8,72], index: 4, kind: input, shape index: {}]   ;;  %s2438_s5 = inlined_call_operand.vmem [shape: f32[8,1], index: 5, kind: input, shape index: {}]   ;;  %s2439_s6 = inlined_call_operand.hbm [shape: f32[8,768], index: 6, kind: output, shape index: {}]  }
   0x1   :  { %12 = vsyncpa [#allocation8], 0 }
   0x2   :  { %13 = vsyncpa [#allocation6], 0  ;;  %s1930_s21 = smov [#allocation4]   ;;  %s1931_s23 = smov [#allocation7]  }
   0x3   :  { %s20_s22 = sshll.u32 %s1930_s21, 4  ;;  %s30_s24 = sshll.u32 %s1931_s23, 4  ;;  %s21_s22 = int_to_ptr.vmem [resolvable:$true] %s20_s22  ;;  %s31_s24 = int_to_ptr.vmem [resolvable:$true] %s30_s24 }
   0x4   :  { %s1858_s27 = scalar_lea.hbm %s2433_s0, 896 }
   0x5   :  { %p1859_p0 = scmp.ne.s32.totalorder %s2433_s0, %s1858_s27  ;;  %p1862_p1 = scmp.lt.u32.totalorder %s1858_s27, %s2433_s0 }
   0x7   :  { %p1864_p2 = pnand %p1862_p1, %p1859_p0 }
   0x9   :  { %1867 = shalt.err (!%p1864_p2)
}
   0xa   :  { %s1868_s8 = scalar_lea.vmem %s21_s22, 896  ;;  %p1873_p4 = scmp.lt.s32.totalorder %s21_s22, %s21_s22 }
   0xb   :  { %p1869_p3 = scmp.ne.s32.totalorder %s21_s22, %s1868_s8  ;;  %p1874_p5 = scmp.lt.s32.totalorder %s1868_s8, %s1868_s8 }
   0xd   :  { %p1875_p6 = por %p1874_p5, %p1873_p4 }
   0xf   :  { %p1876_p7 = pnand %p1875_p6, %p1869_p3 }
  0x11   :  { %1879 = shalt.err (!%p1876_p7)
}
  0x12   :  { %23 = dma.hbm_to_vmem [thread:$0]  %s2433_s0, 896, %s21_s22, [#allocation5]  }
  0x13   :  { %s1880_s13 = scalar_lea.hbm %s2434_s1, 96 }
  0x14   :  { %p1881_p8 = scmp.ne.s32.totalorder %s2434_s1, %s1880_s13  ;;  %p1884_p9 = scmp.lt.u32.totalorder %s1880_s13, %s2434_s1 }
  0x16   :  { %p1886_p10 = pnand %p1884_p9, %p1881_p8 }
  0x18   :  { %1889 = shalt.err (!%p1886_p10)
}
  0x19   :  { %s1890_s18 = scalar_lea.vmem %s31_s24, 96  ;;  %p1895_p12 = scmp.lt.s32.totalorder %s31_s24, %s31_s24 }
  0x1a   :  { %p1891_p11 = scmp.ne.s32.totalorder %s31_s24, %s1890_s18  ;;  %p1896_p13 = scmp.lt.s32.totalorder %s1890_s18, %s1890_s18 }
  0x1c   :  { %p1897_p0 = por %p1896_p13, %p1895_p12 }
  0x1e   :  { %p1898_p1 = pnand %p1897_p0, %p1891_p11 }
  0x20   :  { %1901 = shalt.err (!%p1898_p1)
}
  0x21   :  { %33 = dma.hbm_to_vmem [thread:$0]  %s2434_s1, 96, %s31_s24, [#allocation8]  }
  0x22   :  { %1924 = dma.done.wait [#allocation5], 896  }
  0x23   :  { %1925 = vsyncadd [#allocation5], 4294966400 }
  0x24   :  { %1926 = dma.done.wait [#allocation8], 96  }
  0x25   :  { %1927 = vsyncadd [#allocation8], 4294967200  ;;  %v2003_v0 = vld [vmem:[#allocation4 + $0x20] sm:$0xff]  ;;  %v2005_v1 = vld [vmem:[#allocation4 + $0x28] sm:$0xff]  ;;  %s1932_s1 = smov 127   ;;  %s1933_s20 = smov 126  }
  0x26   :  { %v2007_v2 = vld [vmem:[#allocation4 + $0x8] sm:$0xff]  ;;  %v1656_v3 = vpack.i.bf16 %v2005_v1, %v2003_v0  ;;  %v2011_v4 = vld [vmem:[#allocation4 + $0x10] sm:$0xff]  ;;  %v2013_v5 = vld [vmem:[#allocation4] sm:$0xff]  ;;  %s1934_s21 = smov 110   ;;  %s1935_s22 = smov 109   ;;  %v1939_v10 = vmov 0.0  }
  0x27   :  { %v2015_v6 = vld [vmem:[#allocation4 + $0x18] sm:$0xff]  ;;  %v1646_v7 = vpack.i.bf16 %v2011_v4, %v2007_v2  ;;  %s1936_s23 = smov 108   ;;  %s1937_s24 = smov 92   ;;  %v66_v9 = vld [vmem:[#allocation4 + $0x30] sm:$0xff]  ;;  %565 = vmatprep.mubr.f32.mxu0 %v1939_v10  ;;  %720 = vst [vmem:[#allocation3] sm:$0xff] %v1939_v10  ;;  %636 = vmatprep.mubr.f32.mxu1 %v1939_v10  ;;  %v1941_v12 = vmov 0  }
  0x28   :  { %1657 = vrot.lane.b32.xlu1 %v1656_v3, %s1932_s1  ;;  %v1651_v8 = vpack.i.bf16 %v2015_v6, %v2013_v5  ;;  %s1938_s25 = smov 91   ;;  %s1940_s26 = smov 90   ;;  %v1721_v11 = vpack.i.bf16 %v66_v9, %v2005_v1  ;;  %1857 = vset.pattern.permute.xlu0 %v1941_v12  ;;  %v491_v13 = vld [vmem:[%s2436_s3] sm:$0xff]  ;;  %vm88_vm0 = vcmask 1039360   ;;  %vm135_vm1 = vcmask 1031168  }
  0x29   :  { %1647 = vrot.lane.b32.xlu0 %v1646_v7, %s1932_s1  ;;  %1751 = vset.pattern.permute.xlu1 %v1941_v12  ;;  %vm182_vm2 = vcmask 900096   ;;  %vm229_vm3 = vcmask 891904   ;;  %vm276_vm4 = vcmask 883712   ;;  %vm323_vm5 = vcmask 752640  }
  0x2a   :  { %vm370_vm6 = vcmask 744448   ;;  %vm417_vm7 = vcmask 736256   ;;  %vm497_vm8 = vcmask 588800   ;;  %vm726_vm9 = vcmask 310272  }
  0x2b   :  { %727 = vst.msk [vmem:[#allocation3 + $0x30] sm:$0xff] %vm726_vm9, %v1939_v10  ;;  %vm797_vm10 = vcmask 1047704   ;;  %vm784_vm11 = vcmask 154624  }
  0x2c   :  { %1662 = vrot.lane.b32.xlu1 %v1646_v7, %s1933_s20 }
  0x2d   :  { %1652 = vrot.lane.b32.xlu0 %v1651_v8, %s1932_s1 }
  0x30   :  { %1672 = vrot.lane.b32.xlu1 %v1651_v8, %s1933_s20 }
  0x31   :  { %1667 = vrot.lane.b32.xlu0 %v1646_v7, %s1934_s21 }
  0x34   :  { %1677 = vrot.lane.b32.xlu1 %v1651_v8, %s1934_s21 }
  0x35   :  { %129 = vrot.lane.b32.xlu0 %v2003_v0, %s1933_s20 }
  0x38   :  { %1682 = vrot.lane.b32.xlu1 %v1646_v7, %s1935_s22 }
  0x39   :  { %176 = vrot.lane.b32.xlu0 %v2003_v0, %s1934_s21 }
  0x3c   :  { %1692 = vrot.lane.b32.xlu1 %v1651_v8, %s1935_s22 }
  0x3d   :  { %1687 = vrot.lane.b32.xlu0 %v1646_v7, %s1936_s23 }
  0x40   :  { %1697 = vrot.lane.b32.xlu1 %v1651_v8, %s1936_s23 }
  0x41   :  { %223 = vrot.lane.b32.xlu0 %v2003_v0, %s1935_s22 }
  0x44   :  { %1702 = vrot.lane.b32.xlu1 %v1646_v7, %s1937_s24 }
  0x45   :  { %270 = vrot.lane.b32.xlu0 %v2003_v0, %s1936_s23 }
  0x48   :  { %1712 = vrot.lane.b32.xlu1 %v1651_v8, %s1937_s24 }
  0x49   :  { %1707 = vrot.lane.b32.xlu0 %v1646_v7, %s1938_s25 }
  0x4c   :  { %1717 = vrot.lane.b32.xlu1 %v1651_v8, %s1938_s25 }
  0x4d   :  { %317 = vrot.lane.b32.xlu0 %v2003_v0, %s1937_s24 }
  0x50   :  { %86 = vrot.lane.b32.xlu1 %v66_v9, %s1932_s1 }
  0x51   :  { %364 = vrot.lane.b32.xlu0 %v2003_v0, %s1938_s25 }
  0x54   :  { %407 = vrot.lane.b32.xlu1 %v2011_v4, %s1940_s26 }
  0x55   :  { %405 = vrot.lane.b32.xlu0 %v2007_v2, %s1940_s26 }
  0x58   :  { %409 = vrot.lane.b32.xlu1 %v2015_v6, %s1940_s26 }
  0x59   :  { %403 = vrot.lane.b32.xlu0 %v2013_v5, %s1940_s26 }
  0x5c   :  { %1722 = vrot.lane.b32.xlu1 %v1721_v11, %s1933_s20 }
  0x5d   :  { %411 = vrot.lane.b32.xlu0 %v2003_v0, %s1940_s26 }
  0x60   :  { %1732 = vrot.lane.b32.xlu1 %v1721_v11, %s1935_s22 }
  0x61   :  { %1727 = vrot.lane.b32.xlu0 %v1721_v11, %s1934_s21 }
  0x64   :  { %1742 = vrot.lane.b32.xlu1 %v1721_v11, %s1937_s24 }
  0x65   :  { %1737 = vrot.lane.b32.xlu0 %v1721_v11, %s1936_s23 }
  0x68   :  { %413 = vrot.lane.b32.xlu1 %v2005_v1, %s1940_s26 }
  0x69   :  { %1747 = vrot.lane.b32.xlu0 %v1721_v11, %s1938_s25 }
  0x6c   :  { %494 = vperm.xlu1 %1751, %v491_v13  }
  0x6d   :  { %415 = vrot.lane.b32.xlu0 %v66_v9, %s1940_s26 }
  0x9a   :  { %v2075_v14 = vpop.permute.xlu1 %1657 }
  0x9b   :  { %v1648_v15 = vpop.permute.xlu0 %1647  ;;  %v1659_v18 = vunpack.i.l.bf16 %v2075_v14 }
  0x9c   :  { %v1650_v16 = vunpack.i.h.bf16 %v1648_v15  ;;  %v1649_v17 = vunpack.i.l.bf16 %v1648_v15 }
  0x9e   :  { %v1663_v19 = vpop.permute.xlu1 %1662  ;;  %v90_v20 = vsel %vm88_vm0, %v1649_v17, %v1650_v16 }
  0x9f   :  { %v1653_v21 = vpop.permute.xlu0 %1652  ;;  %v1536_v22 = vpack.c.bf16 %v90_v20, %v2007_v2  ;;  %v1665_v23 = vunpack.i.h.bf16 %v1663_v19  ;;  %v1664_v24 = vunpack.i.l.bf16 %v1663_v19 }
  0xa0   :  { %v1655_v25 = vunpack.i.h.bf16 %v1653_v21  ;;  %v1654_v26 = vunpack.i.l.bf16 %v1653_v21 }
  0xa1   :  { %1537 = vmatprep.subr.bf16.mxu0 %v1536_v22  ;;  %v137_v37 = vsel %vm135_vm1, %v1664_v24, %v1665_v23 }
  0xa2   :  { %v1673_v27 = vpop.permute.xlu1 %1672  ;;  %v89_v28 = vsel %vm88_vm0, %v1654_v26, %v1649_v17  ;;  %v92_v29 = vsel %vm88_vm0, %v1655_v25, %v1659_v18  ;;  %v91_v30 = vsel %vm88_vm0, %v1650_v16, %v1655_v25 }
  0xa3   :  { %v1668_v31 = vpop.permute.xlu0 %1667  ;;  %v1538_v32 = vpack.c.bf16 %v89_v28, %v2013_v5  ;;  %v1552_v33 = vpack.c.bf16 %v92_v29, %v2015_v6  ;;  %v1554_v36 = vpack.c.bf16 %v91_v30, %v2011_v4  ;;  %v1674_v38 = vunpack.i.l.bf16 %v1673_v27 }
  0xa4   :  { %v1670_v34 = vunpack.i.h.bf16 %v1668_v31  ;;  %v1669_v35 = vunpack.i.l.bf16 %v1668_v31  ;;  %v1675_v45 = vunpack.i.h.bf16 %v1673_v27 }
  0xa5   :  { %1539 = vmatpush1.bf16.msra.mxu0 %v1538_v32  ;;  %1553 = vmatprep.subr.bf16.mxu1 %v1552_v33  ;;  %v136_v46 = vsel %vm135_vm1, %v1674_v38, %v1664_v24 }
  0xa6   :  { %1555 = vmatpush1.bf16.msra.mxu1 %v1554_v36  ;;  %v1678_v39 = vpop.permute.xlu1 %1677  ;;  %v184_v40 = vsel %vm182_vm2, %v1669_v35, %v1670_v34  ;;  %v138_v57 = vsel %vm135_vm1, %v1665_v23, %v1675_v45 }
  0xa7   :  { %v1680_v41 = vunpack.i.h.bf16 %v1678_v39  ;;  %v1679_v42 = vunpack.i.l.bf16 %v1678_v39  ;;  %v2090_v43 = vpop.permute.xlu0 %129  ;;  %v1540_v44 = vpack.c.bf16 %v184_v40, %v137_v37 }
  0xa8   :  { %v139_v52 = vsel %vm135_vm1, %v1675_v45, %v2090_v43 }
  0xa9   :  { %1541 = vmatprep.subr.bf16.mxu0 %v1540_v44  ;;  %v183_v47 = vsel %vm182_vm2, %v1679_v42, %v1669_v35  ;;  %v185_v51 = vsel %vm182_vm2, %v1670_v34, %v1680_v41 }
  0xaa   :  { %v1683_v48 = vpop.permute.xlu1 %1682  ;;  %v1542_v49 = vpack.c.bf16 %v183_v47, %v136_v46  ;;  %v1558_v59 = vpack.c.bf16 %v185_v51, %v138_v57  ;;  %v1660_v51 = vunpack.i.h.bf16 %v2075_v14 }
  0xab   :  { %v2094_v50 = vpop.permute.xlu0 %176  ;;  %v1685_v53 = vunpack.i.h.bf16 %v1683_v48  ;;  %v1684_v54 = vunpack.i.l.bf16 %v1683_v48 }
  0xac   :  { %v186_v55 = vsel %vm182_vm2, %v1680_v41, %v2094_v50  ;;  %1543 = vmatpush1.bf16.msra.mxu0 %v1542_v49  ;;  %v93_v57 = vsel %vm88_vm0, %v1659_v18, %v1660_v51 }
  0xad   :  { %v1556_v56 = vpack.c.bf16 %v186_v55, %v139_v52  ;;  %v231_v63 = vsel %vm229_vm3, %v1684_v54, %v1685_v53 }
  0xae   :  { %v1693_v58 = vpop.permute.xlu1 %1692 }
  0xaf   :  { %v1688_v60 = vpop.permute.xlu0 %1687  ;;  %1557 = vmatprep.subr.bf16.mxu1 %v1556_v56  ;;  %v1694_v2 = vunpack.i.l.bf16 %v1693_v58  ;;  %v1695_v9 = vunpack.i.h.bf16 %v1693_v58 }
  0xb0   :  { %v1690_v61 = vunpack.i.h.bf16 %v1688_v60  ;;  %v1689_v62 = vunpack.i.l.bf16 %v1688_v60  ;;  %1559 = vmatpush1.bf16.msra.mxu1 %v1558_v59  ;;  %v2139_v60 = vld [vmem:[%s2435_s2] sm:$0xff]  ;;  %s1942_s2 = smov 19  }
  0xb1   :  { %v230_v11 = vsel %vm229_vm3, %v1694_v2, %v1684_v54  ;;  %v232_v24 = vsel %vm229_vm3, %v1685_v53, %v1695_v9 }
  0xb2   :  { %v1698_v3 = vpop.permute.xlu1 %1697  ;;  %v278_v4 = vsel %vm276_vm4, %v1689_v62, %v1690_v61 }
  0xb3   :  { %v1700_v5 = vunpack.i.h.bf16 %v1698_v3  ;;  %v1699_v6 = vunpack.i.l.bf16 %v1698_v3  ;;  %v2104_v7 = vpop.permute.xlu0 %223  ;;  %v1544_v8 = vpack.c.bf16 %v278_v4, %v231_v63  ;;  %v1570_v63 = vpack.c.bf16 %v93_v57, %v2003_v0 }
  0xb4   :  { %v233_v19 = vsel %vm229_vm3, %v1695_v9, %v2104_v7 }
  0xb5   :  { %1545 = vmatprep.subr.bf16.mxu0 %v1544_v8  ;;  %v277_v12 = vsel %vm276_vm4, %v1699_v6, %v1689_v62  ;;  %v279_v17 = vsel %vm276_vm4, %v1690_v61, %v1700_v5 }
  0xb6   :  { %v1703_v13 = vpop.permute.xlu1 %1702  ;;  %v1546_v15 = vpack.c.bf16 %v277_v12, %v230_v11  ;;  %v1562_v26 = vpack.c.bf16 %v279_v17, %v232_v24 }
  0xb7   :  { %v2108_v16 = vpop.permute.xlu0 %270  ;;  %v1705_v20 = vunpack.i.h.bf16 %v1703_v13  ;;  %v1704_v21 = vunpack.i.l.bf16 %v1703_v13 }
  0xb8   :  { %v280_v22 = vsel %vm276_vm4, %v1700_v5, %v2108_v16  ;;  %1547 = vmatpush1.bf16.msra.mxu0 %v1546_v15 }
  0xb9   :  { %v1560_v23 = vpack.c.bf16 %v280_v22, %v233_v19  ;;  %v325_v30 = vsel %vm323_vm5, %v1704_v21, %v1705_v20 }
  0xba   :  { %v1713_v25 = vpop.permute.xlu1 %1712 }
  0xbb   :  { %v1708_v27 = vpop.permute.xlu0 %1707  ;;  %1561 = vmatprep.subr.bf16.mxu1 %v1560_v23  ;;  %v1714_v31 = vunpack.i.l.bf16 %v1713_v25  ;;  %v1715_v38 = vunpack.i.h.bf16 %v1713_v25 }
  0xbc   :  { %v1710_v28 = vunpack.i.h.bf16 %v1708_v27  ;;  %v1709_v29 = vunpack.i.l.bf16 %v1708_v27  ;;  %1563 = vmatpush1.bf16.msra.mxu1 %v1562_v26 }
  0xbd   :  { %v324_v39 = vsel %vm323_vm5, %v1714_v31, %v1704_v21  ;;  %v326_v49 = vsel %vm323_vm5, %v1705_v20, %v1715_v38 }
  0xbe   :  { %v1718_v32 = vpop.permute.xlu1 %1717  ;;  %v372_v33 = vsel %vm370_vm6, %v1709_v29, %v1710_v28 }
  0xbf   :  { %v1720_v34 = vunpack.i.h.bf16 %v1718_v32  ;;  %v1719_v35 = vunpack.i.l.bf16 %v1718_v32  ;;  %v2118_v36 = vpop.permute.xlu0 %317  ;;  %v1548_v37 = vpack.c.bf16 %v372_v33, %v325_v30 }
  0xc0   :  { %v327_v46 = vsel %vm323_vm5, %v1715_v38, %v2118_v36 }
  0xc1   :  { %1549 = vmatprep.subr.bf16.mxu0 %v1548_v37  ;;  %v371_v40 = vsel %vm370_vm6, %v1719_v35, %v1709_v29  ;;  %v373_v45 = vsel %vm370_vm6, %v1710_v28, %v1720_v34 }
  0xc2   :  { %v87_v41 = vpop.permute.xlu1 %86  ;;  %v1550_v42 = vpack.c.bf16 %v371_v40, %v324_v39  ;;  %v1566_v53 = vpack.c.bf16 %v373_v45, %v326_v49 }
  0xc3   :  { %v2122_v44 = vpop.permute.xlu0 %364  ;;  %v94_v56 = vsel %vm88_vm0, %v1660_v51, %v87_v41 }
  0xc4   :  { %v374_v47 = vsel %vm370_vm6, %v1720_v34, %v2122_v44  ;;  %1551 = vmatpush1.bf16.msra.mxu0 %v1550_v42  ;;  %v1568_v61 = vpack.c.bf16 %v94_v56, %v2005_v1 }
  0xc5   :  { %v1564_v48 = vpack.c.bf16 %v374_v47, %v327_v46  ;;  %v728_v47 = vld [vmem:[#allocation7] sm:$0x3f] }
  0xc6   :  { %v408_v52 = vpop.permute.xlu1 %407 }
  0xc7   :  { %v406_v54 = vpop.permute.xlu0 %405  ;;  %1565 = vmatprep.subr.bf16.mxu1 %v1564_v48 }
  0xc8   :  { %1567 = vmatpush1.bf16.msra.mxu1 %v1566_v53  ;;  %v419_v55 = vsel %vm417_vm7, %v406_v54, %v408_v52 }
  0xc9   :  { %517 = vmatprep.subr.mxu0 %v419_v55 }
  0xca   :  { %v410_v58 = vpop.permute.xlu1 %409 }
  0xcb   :  { %v404_v59 = vpop.permute.xlu0 %403  ;;  %v420_v1 = vsel %vm417_vm7, %v408_v52, %v410_v58 }
  0xcc   :  { %v418_v62 = vsel %vm417_vm7, %v404_v59, %v406_v54 }
  0xcd   :  { %518 = vmatpush1.msra.mxu0 %v418_v62 }
  0xce   :  { %1530 = vmatmul.mubr.msk.f32.vlgmr.msra.gmra.mrb[0].mxu0 %vm497_vm8, %v2139_v60  ;;  %1569 = vmatprep.subr.bf16.mxu0 %v1568_v61  ;;  %v1723_v14 = vpop.permute.xlu1 %1722 }
  0xcf   :  { %v412_v18 = vpop.permute.xlu0 %411  ;;  %1571 = vmatpush1.bf16.msra.mxu0 %v1570_v63  ;;  %707 = vmatprep.mubr.f32.mxu0 %v1939_v10  ;;  %v1725_v2 = vunpack.i.h.bf16 %v1723_v14  ;;  %v1724_v4 = vunpack.i.l.bf16 %v1723_v14 }
  0xd0   :  { %v421_v3 = vsel %vm417_vm7, %v410_v58, %v412_v18 }
  0xd1   :  { %588 = vmatprep.subr.mxu1 %v421_v3  ;;  %v141_v11 = vsel %vm135_vm1, %v1724_v4, %v1725_v2  ;;  %v140_v12 = vsel %vm135_vm1, %v2090_v43, %v1724_v4 }
  0xd2   :  { %589 = vmatpush1.msra.mxu1 %v420_v1  ;;  %v1733_v5 = vpop.permute.xlu1 %1732 }
  0xd3   :  { %v1728_v0 = vpop.permute.xlu0 %1727  ;;  %1531 = vmatmul.mubr.msk.f32.vlgmr.msra.gmra.mrb[0].mxu1 %vm497_vm8, %v2139_v60  ;;  %v1735_v6 = vunpack.i.h.bf16 %v1733_v5  ;;  %v1734_v13 = vunpack.i.l.bf16 %v1733_v5 }
  0xd4   :  { %v1730_v8 = vunpack.i.h.bf16 %v1728_v0  ;;  %v1729_v9 = vunpack.i.l.bf16 %v1728_v0  ;;  %1313 = vmatprep.mubr.f32.mxu1 %v1939_v10 }
  0xd5   :  { %v235_v26 = vsel %vm229_vm3, %v1734_v13, %v1735_v6  ;;  %v234_v27 = vsel %vm229_vm3, %v2104_v7, %v1734_v13 }
  0xd6   :  { %v187_v15 = vsel %vm182_vm2, %v2094_v50, %v1729_v9  ;;  %v188_v17 = vsel %vm182_vm2, %v1729_v9, %v1730_v8  ;;  %v1743_v20 = vpop.permute.xlu1 %1742 }
  0xd7   :  { %v1574_v19 = vpack.c.bf16 %v187_v15, %v140_v12  ;;  %v1738_v21 = vpop.permute.xlu0 %1737  ;;  %v1572_v22 = vpack.c.bf16 %v188_v17, %v141_v11  ;;  %v1745_v23 = vunpack.i.h.bf16 %v1743_v20  ;;  %v1744_v43 = vunpack.i.l.bf16 %v1743_v20 }
  0xd8   :  { %v1740_v24 = vunpack.i.h.bf16 %v1738_v21  ;;  %v1739_v25 = vunpack.i.l.bf16 %v1738_v21 }
  0xd9   :  { %1573 = vmatprep.subr.bf16.mxu0 %v1572_v22  ;;  %v329_v34 = vsel %vm323_vm5, %v1744_v43, %v1745_v23  ;;  %v328_v35 = vsel %vm323_vm5, %v2118_v36, %v1744_v43  ;;  %v730_v36 = vlaneseq }
  0xda   :  { %v281_v28 = vsel %vm276_vm4, %v2108_v16, %v1739_v25  ;;  %1575 = vmatpush1.bf16.msra.mxu0 %v1574_v19  ;;  %v282_v50 = vsel %vm276_vm4, %v1739_v25, %v1740_v24  ;;  %v414_v37 = vpop.permute.xlu1 %413 }
  0xdb   :  { %v1578_v29 = vpack.c.bf16 %v281_v28, %v234_v27  ;;  %v1748_v30 = vpop.permute.xlu0 %1747  ;;  %v1576_v31 = vpack.c.bf16 %v282_v50, %v235_v26  ;;  %v422_v42 = vsel %vm417_vm7, %v412_v18, %v414_v37 }
  0xdc   :  { %v1750_v32 = vunpack.i.h.bf16 %v1748_v30  ;;  %v1749_v33 = vunpack.i.l.bf16 %v1748_v30 }
  0xdd   :  { %1577 = vmatprep.subr.bf16.mxu0 %v1576_v31 }
  0xde   :  { %v375_v7 = vsel %vm370_vm6, %v2122_v44, %v1749_v33  ;;  %1579 = vmatpush1.bf16.msra.mxu0 %v1578_v29  ;;  %v376_v16 = vsel %vm370_vm6, %v1749_v33, %v1750_v32  ;;  %v731_v44 = vshrl.u32 %v730_v36, 7  ;;  %v1467_v36 = vld [vmem:[#allocation4 + $0x28] sm:$0xff] }
  0xdf   :  { %v1582_v38 = vpack.c.bf16 %v375_v7, %v328_v35  ;;  %v1580_v39 = vpack.c.bf16 %v376_v16, %v329_v34  ;;  %v416_v40 = vpop.permute.xlu0 %415 }
  0xe0   :  { %v423_v41 = vsel %vm417_vm7, %v414_v37, %v416_v40  ;;  %v732_v45 = vsub.s32 0, %v731_v44  ;;  %v736_v48 = vsub.s32 1, %v731_v44  ;;  %v740_v56 = vsub.s32 2, %v731_v44  ;;  %v1463_v40 = vld [vmem:[#allocation4 + $0x8] sm:$0xff] }
  0xe1   :  { %1581 = vmatprep.subr.bf16.mxu0 %v1580_v39  ;;  %v744_v57 = vsub.s32 3, %v731_v44  ;;  %v748_v6 = vsub.s32 4, %v731_v44  ;;  %v752_v8 = vsub.s32 5, %v731_v44  ;;  %v1462_v39 = vld [vmem:[#allocation4] sm:$0xff] }
  0xe2   :  { %1583 = vmatpush1.bf16.msra.mxu0 %v1582_v38  ;;  %v733_v53 = vrot.slane %v728_v47, %v732_v45  ;;  %v737_v55 = vrot.slane %v728_v47, %v736_v48  ;;  %v741_v14 = vrot.slane %v728_v47, %v740_v56  ;;  %v1240_v38 = vld [vmem:[%s2438_s5] sm:$0xff]  ;;  %v1466_v44 = vld [vmem:[#allocation4 + $0x20] sm:$0xff]  ;;  %v1468_v45 = vld [vmem:[#allocation4 + $0x30] sm:$0xff] }
  0xe3   :  { %659 = vmatprep.subr.mxu0 %v423_v41  ;;  %v745_v3 = vrot.slane %v728_v47, %v744_v57  ;;  %v749_v12 = vrot.slane %v728_v47, %v748_v6  ;;  %v753_v17 = vrot.slane %v728_v47, %v752_v8  ;;  %v1464_v41 = vld [vmem:[#allocation4 + $0x10] sm:$0xff] }
  0xe6   :  { %660 = vmatpush1.msra.mxu0 %v422_v42  ;;  %v1465_v42 = vld [vmem:[#allocation4 + $0x18] sm:$0xff] }
  0xe7   :  { %1532 = vmatmul.mubr.msk.f32.vlgmr.msra.gmra.mrb[2].mxu0 %vm497_vm8, %v2139_v60 }
  0xe8   :  { %1384 = vmatprep.mubr.f32.mxu0 %v1939_v10 }
  0xeb   :  { %v495_v46 = vpop.permute.xlu1 %494 }
 0x1a1   :  { %v567_v49 = vpop.f32.mrb[0].mxu0 }
 0x1a2   :  { %v569_v51 = vpop.f32.mrb[1].mxu0  ;;  %v568_v52 = vadd.f32 %v567_v49, %v495_v46 }
 0x1a3   :  { %v570_v54 = vadd.f32 %v569_v51, %v495_v46 }
 0x1a4   :  { %v714_v58 = vmax.f32 %v568_v52, 0.0 }
 0x1a5   :  { %v715_v59 = vmax.f32 %v570_v54, 0.0 }
 0x1a6   :  { %v638_v61 = vpop.f32.mrb[0].mxu1  ;;  %v760_v60 = vmul.f32 %v733_v53, %v714_v58 }
 0x1a7   :  { %v761_v62 = vmul.f32 %v737_v55, %v715_v59  ;;  %v639_v63 = vadd.f32 %v638_v61, %v495_v46  ;;  %v640_v18 = vpop.f32.mrb[1].mxu1 }
 0x1a8   :  { %v641_v2 = vadd.f32 %v640_v18, %v495_v46  ;;  %772 = vrot.lane.b32.xlu0 %v760_v60, %s1942_s2 }
 0x1a9   :  { %v716_v1 = vmax.f32 %v639_v63, 0.0  ;;  %774 = vrot.lane.b32.xlu1 %v761_v62, %s1942_s2 }
 0x1aa   :  { %v717_v4 = vmax.f32 %v641_v2, 0.0 }
 0x1ab   :  { %v762_v5 = vmul.f32 %v741_v14, %v716_v1 }
 0x1ac   :  { %v763_v0 = vmul.f32 %v745_v3, %v717_v4 }
 0x1ad   :  { %776 = vrot.lane.b32.xlu0 %v762_v5, %s1942_s2 }
 0x1ae   :  { %778 = vrot.lane.b32.xlu1 %v763_v0, %s1942_s2 }
 0x1ba   :  { %v709_v9 = vpop.f32.mrb[2].mxu0 }
 0x1bb   :  { %v710_v11 = vadd.f32 %v709_v9, %v495_v46  ;;  %v711_v13 = vpop.f32.mrb[3].mxu0 }
 0x1bc   :  { %v712_v15 = vadd.f32 %v711_v13, %v495_v46 }
 0x1bd   :  { %v718_v19 = vmax.f32 %v710_v11, 0.0 }
 0x1be   :  { %v719_v20 = vmax.f32 %v712_v15, 0.0 }
 0x1bf   :  { %v764_v21 = vmul.f32 %v749_v12, %v718_v19 }
 0x1c0   :  { %v765_v22 = vmul.f32 %v753_v17, %v719_v20 }
 0x1c1   :  { %780 = vrot.lane.b32.xlu0 %v764_v21, %s1942_s2 }
 0x1c2   :  { %782 = vrot.lane.b32.xlu1 %v765_v22, %s1942_s2 }
 0x21a   :  { %v773_v23 = vpop.permute.xlu0 %772 }
 0x21b   :  { %v775_v24 = vpop.permute.xlu1 %774  ;;  %798 = vst.msk [vmem:[#allocation3] sm:$0xff] %vm797_vm10, %v773_v23 }
 0x21c   :  { %v2177_v25 = vsel %vm784_vm11, %v773_v23, %v775_v24 }
 0x21f   :  { %v777_v26 = vpop.permute.xlu0 %776 }
 0x220   :  { %v2180_v27 = vsel %vm784_vm11, %v775_v24, %v777_v26  ;;  %v779_v43 = vpop.permute.xlu1 %778 }
 0x221   :  { %v2183_v28 = vsel %vm784_vm11, %v777_v26, %v779_v43  ;;  %v1752_v29 = vpack.i.bf16 %v2180_v27, %v2177_v25 }
 0x222   :  { %v2185_v50 = vld [vmem:[#allocation3] sm:$0xff] }
 0x223   :  { %1153 = vrot.lane.b32.xlu0 %v2185_v50, %s1940_s26  ;;  %1107 = vrot.lane.b32.xlu1 %v2185_v50, %s1938_s25  ;;  %v1757_v30 = vpack.i.bf16 %v2183_v28, %v2185_v50 }
 0x227   :  { %1753 = vrot.lane.b32.xlu0 %v1752_v29, %s1932_s1  ;;  %1758 = vrot.lane.b32.xlu1 %v1757_v30, %s1932_s1 }
 0x22b   :  { %1763 = vrot.lane.b32.xlu0 %v1752_v29, %s1933_s20  ;;  %1768 = vrot.lane.b32.xlu1 %v1752_v29, %s1934_s21 }
 0x22f   :  { %1773 = vrot.lane.b32.xlu0 %v1757_v30, %s1933_s20  ;;  %1778 = vrot.lane.b32.xlu1 %v1757_v30, %s1934_s21 }
 0x233   :  { %v781_v31 = vpop.permute.xlu0 %780  ;;  %1783 = vrot.lane.b32.xlu0 %v1752_v29, %s1935_s22  ;;  %1788 = vrot.lane.b32.xlu1 %v1752_v29, %s1936_s23 }
 0x234   :  { %v2204_v32 = vsel %vm784_vm11, %v779_v43, %v781_v31  ;;  %v783_v33 = vpop.permute.xlu1 %782 }
 0x235   :  { %v2207_v34 = vsel %vm784_vm11, %v781_v31, %v783_v33  ;;  %804 = vst.msk [vmem:[#allocation3 + $0x30] sm:$0xff] %vm784_vm11, %v783_v33  ;;  %v1822_v7 = vpack.i.bf16 %v2204_v32, %v2183_v28 }
 0x236   :  { %v1827_v16 = vpack.i.bf16 %v2207_v34, %v2204_v32 }
 0x237   :  { %1793 = vrot.lane.b32.xlu0 %v1757_v30, %s1935_s22  ;;  %1798 = vrot.lane.b32.xlu1 %v1757_v30, %s1936_s23 }
 0x23b   :  { %1803 = vrot.lane.b32.xlu0 %v1752_v29, %s1937_s24  ;;  %1808 = vrot.lane.b32.xlu1 %v1752_v29, %s1938_s25 }
 0x23c   :  { %v823_v35 = vld [vmem:[#allocation3 + $0x30] sm:$0xff] }
 0x23d   :  { %v1852_v37 = vpack.i.bf16 %v823_v35, %v2207_v34 }
 0x23f   :  { %1813 = vrot.lane.b32.xlu0 %v1757_v30, %s1937_s24  ;;  %1157 = vrot.lane.b32.xlu1 %v2180_v27, %s1940_s26 }
 0x243   :  { %1155 = vrot.lane.b32.xlu0 %v2177_v25, %s1940_s26  ;;  %843 = vrot.lane.b32.xlu1 %v823_v35, %s1932_s1 }
 0x247   :  { %889 = vrot.lane.b32.xlu0 %v823_v35, %s1933_s20  ;;  %1823 = vrot.lane.b32.xlu1 %v1822_v7, %s1938_s25 }
 0x24b   :  { %935 = vrot.lane.b32.xlu0 %v823_v35, %s1934_s21  ;;  %1828 = vrot.lane.b32.xlu1 %v1827_v16, %s1933_s20 }
 0x24f   :  { %981 = vrot.lane.b32.xlu0 %v823_v35, %s1935_s22  ;;  %1833 = vrot.lane.b32.xlu1 %v1827_v16, %s1934_s21 }
 0x253   :  { %1818 = vrot.lane.b32.xlu0 %v1827_v16, %s1932_s1  ;;  %1838 = vrot.lane.b32.xlu1 %v1827_v16, %s1935_s22 }
 0x257   :  { %1027 = vrot.lane.b32.xlu0 %v823_v35, %s1936_s23  ;;  %1843 = vrot.lane.b32.xlu1 %v1827_v16, %s1936_s23 }
 0x25b   :  { %1073 = vrot.lane.b32.xlu0 %v823_v35, %s1937_s24  ;;  %1848 = vrot.lane.b32.xlu1 %v1827_v16, %s1937_s24 }
 0x25f   :  { %1853 = vrot.lane.b32.xlu0 %v1852_v37, %s1938_s25  ;;  %1159 = vrot.lane.b32.xlu1 %v2183_v28, %s1940_s26 }
 0x263   :  { %1161 = vrot.lane.b32.xlu0 %v2204_v32, %s1940_s26  ;;  %1163 = vrot.lane.b32.xlu1 %v2207_v34, %s1940_s26 }
 0x267   :  { %1165 = vrot.lane.b32.xlu0 %v823_v35, %s1940_s26  ;;  %1243 = vperm.xlu1 %1751, %v1240_v38  }
 0x26b   :  { %1476 = vrot.lane.b32.xlu0 %v1462_v39, %s1935_s22  ;;  %1478 = vrot.lane.b32.xlu1 %v1463_v40, %s1935_s22 }
 0x26f   :  { %1480 = vrot.lane.b32.xlu0 %v1464_v41, %s1935_s22  ;;  %1482 = vrot.lane.b32.xlu1 %v1465_v42, %s1935_s22 }
 0x273   :  { %1486 = vrot.lane.b32.xlu1 %v1467_v36, %s1935_s22  ;;  %1484 = vrot.lane.b32.xlu0 %v1466_v44, %s1935_s22 }
 0x277   :  { %1488 = vrot.lane.b32.xlu0 %v1468_v45, %s1935_s22 }
 0x295   :  { %v2255_v46 = vpop.permute.xlu1 %1107  ;;  %v2257_v47 = vpop.permute.xlu0 %1153 }
 0x299   :  { %v2259_v48 = vpop.permute.xlu0 %1753  ;;  %v2261_v49 = vpop.permute.xlu1 %1758 }
 0x29a   :  { %v1756_v51 = vunpack.i.h.bf16 %v2259_v48  ;;  %v1755_v52 = vunpack.i.l.bf16 %v2259_v48  ;;  %v1760_v53 = vunpack.i.l.bf16 %v2261_v49 }
 0x29c   :  { %v845_v54 = vsel %vm88_vm0, %v1760_v53, %v1755_v52  ;;  %v846_v55 = vsel %vm88_vm0, %v1755_v52, %v1756_v51 }
 0x29d   :  { %v1586_v56 = vpack.c.bf16 %v845_v54, %v2185_v50  ;;  %v2271_v57 = vpop.permute.xlu0 %1763  ;;  %v2273_v58 = vpop.permute.xlu1 %1768  ;;  %v1584_v59 = vpack.c.bf16 %v846_v55, %v2177_v25 }
 0x29e   :  { %v1766_v61 = vunpack.i.h.bf16 %v2271_v57  ;;  %v1765_v60 = vunpack.i.l.bf16 %v2271_v57  ;;  %v1771_v62 = vunpack.i.h.bf16 %v2273_v58  ;;  %v1770_v63 = vunpack.i.l.bf16 %v2273_v58 }
 0x29f   :  { %1585 = vmatprep.subr.bf16.mxu1 %v1584_v59 }
 0x2a0   :  { %1587 = vmatpush1.bf16.msra.mxu1 %v1586_v56  ;;  %v892_v14 = vsel %vm135_vm1, %v1765_v60, %v1766_v61  ;;  %v938_v18 = vsel %vm182_vm2, %v1770_v63, %v1771_v62  ;;  %v2345_v56 = vld [vmem:[%s2437_s4] sm:$0xff]  ;;  %s1943_s4 = smov [#allocation9]  }
 0x2a1   :  { %v2286_v2 = vpop.permute.xlu0 %1773  ;;  %v2288_v3 = vpop.permute.xlu1 %1778  ;;  %v1588_v1 = vpack.c.bf16 %v938_v18, %v892_v14  ;;  %s1520_s9 = sshll.u32 %s1943_s4, 4  ;;  %s1521_s9 = int_to_ptr.vmem [resolvable:$true] %s1520_s9 }
 0x2a2   :  { %v1775_v4 = vunpack.i.l.bf16 %v2286_v2  ;;  %v1780_v5 = vunpack.i.l.bf16 %v2288_v3  ;;  %v1776_v14 = vunpack.i.h.bf16 %v2286_v2  ;;  %v1781_v18 = vunpack.i.h.bf16 %v2288_v3  ;;  %s1902_s10 = scalar_lea.vmem %s1521_s9, 768  ;;  %p1907_p3 = scmp.lt.s32.totalorder %s1521_s9, %s1521_s9 }
 0x2a3   :  { %1589 = vmatprep.subr.bf16.mxu1 %v1588_v1  ;;  %p1903_p2 = scmp.ne.s32.totalorder %s1521_s9, %s1902_s10  ;;  %p1908_p4 = scmp.lt.s32.totalorder %s1902_s10, %s1902_s10 }
 0x2a4   :  { %v891_v0 = vsel %vm135_vm1, %v1775_v4, %v1765_v60  ;;  %v937_v6 = vsel %vm182_vm2, %v1780_v5, %v1770_v63  ;;  %v1761_v63 = vunpack.i.h.bf16 %v2261_v49  ;;  %v893_v5 = vsel %vm135_vm1, %v1766_v61, %v1776_v14 }
 0x2a5   :  { %v1590_v8 = vpack.c.bf16 %v937_v6, %v891_v0  ;;  %v2294_v9 = vpop.permute.xlu0 %1783  ;;  %v2296_v11 = vpop.permute.xlu1 %1788  ;;  %p1909_p5 = por %p1908_p4, %p1907_p3 }
 0x2a6   :  { %v1786_v12 = vunpack.i.h.bf16 %v2294_v9  ;;  %v1785_v13 = vunpack.i.l.bf16 %v2294_v9  ;;  %v1791_v15 = vunpack.i.h.bf16 %v2296_v11  ;;  %v1790_v17 = vunpack.i.l.bf16 %v2296_v11 }
 0x2a7   :  { %1591 = vmatpush1.bf16.msra.mxu1 %v1590_v8  ;;  %p1910_p6 = pnand %p1909_p5, %p1903_p2 }
 0x2a8   :  { %v984_v19 = vsel %vm229_vm3, %v1785_v13, %v1786_v12  ;;  %v1030_v20 = vsel %vm276_vm4, %v1790_v17, %v1791_v15 }
 0x2a9   :  { %v2308_v21 = vpop.permute.xlu0 %1793  ;;  %v2310_v22 = vpop.permute.xlu1 %1798  ;;  %v1592_v23 = vpack.c.bf16 %v1030_v20, %v984_v19 }
 0x2aa   :  { %v1795_v24 = vunpack.i.l.bf16 %v2308_v21  ;;  %v1800_v25 = vunpack.i.l.bf16 %v2310_v22  ;;  %v1796_v49 = vunpack.i.h.bf16 %v2308_v21  ;;  %v1801_v58 = vunpack.i.h.bf16 %v2310_v22 }
 0x2ab   :  { %1593 = vmatprep.subr.bf16.mxu1 %v1592_v23 }
 0x2ac   :  { %v983_v26 = vsel %vm229_vm3, %v1795_v24, %v1785_v13  ;;  %v1029_v43 = vsel %vm276_vm4, %v1800_v25, %v1790_v17  ;;  %v985_v57 = vsel %vm229_vm3, %v1786_v12, %v1796_v49 }
 0x2ad   :  { %v1594_v50 = vpack.c.bf16 %v1029_v43, %v983_v26  ;;  %v2316_v29 = vpop.permute.xlu0 %1803  ;;  %v2318_v30 = vpop.permute.xlu1 %1808 }
 0x2ae   :  { %v1806_v31 = vunpack.i.h.bf16 %v2316_v29  ;;  %v1805_v33 = vunpack.i.l.bf16 %v2316_v29  ;;  %v1811_v35 = vunpack.i.h.bf16 %v2318_v30  ;;  %v1810_v7 = vunpack.i.l.bf16 %v2318_v30 }
 0x2af   :  { %1595 = vmatpush1.bf16.msra.mxu1 %v1594_v50 }
 0x2b0   :  { %v1076_v16 = vsel %vm323_vm5, %v1805_v33, %v1806_v31  ;;  %v1122_v37 = vsel %vm370_vm6, %v1810_v7, %v1811_v35  ;;  %v1121_v42 = vsel %vm370_vm6, %v2255_v46, %v1810_v7 }
 0x2b1   :  { %v2330_v38 = vpop.permute.xlu0 %1813  ;;  %v2332_v39 = vpop.permute.xlu1 %1157  ;;  %v1596_v40 = vpack.c.bf16 %v1122_v37, %v1076_v16 }
 0x2b2   :  { %v1815_v41 = vunpack.i.l.bf16 %v2330_v38 }
 0x2b3   :  { %1597 = vmatprep.subr.bf16.mxu1 %v1596_v40 }
 0x2b4   :  { %v1075_v36 = vsel %vm323_vm5, %v1815_v41, %v1805_v33  ;;  %v1816_v41 = vunpack.i.h.bf16 %v2330_v38 }
 0x2b5   :  { %v1598_v44 = vpack.c.bf16 %v1121_v42, %v1075_v36  ;;  %v1156_v45 = vpop.permute.xlu0 %1155  ;;  %v844_v52 = vpop.permute.xlu1 %843 }
 0x2b6   :  { %v1168_v53 = vsel %vm417_vm7, %v1156_v45, %v2332_v39  ;;  %v1167_v46 = vsel %vm417_vm7, %v2257_v47, %v1156_v45  ;;  %v847_v47 = vsel %vm88_vm0, %v1756_v51, %v1761_v63 }
 0x2b7   :  { %1599 = vmatpush1.bf16.msra.mxu1 %v1598_v44  ;;  %v1602_v48 = vpack.c.bf16 %v847_v47, %v2180_v27 }
 0x2b8   :  { %1265 = vmatprep.subr.mxu1 %v1168_v53 }
 0x2b9   :  { %v890_v54 = vpop.permute.xlu0 %889  ;;  %v2340_v55 = vpop.permute.xlu1 %1823 }
 0x2ba   :  { %v1826_v42 = vunpack.i.h.bf16 %v2340_v55  ;;  %v1825_v36 = vunpack.i.l.bf16 %v2340_v55 }
 0x2bb   :  { %1266 = vmatpush1.msra.mxu1 %v1167_v46 }
 0x2bc   :  { %1533 = vmatmul.mubr.msk.f32.vlgmr.msra.gmra.mrb[2].mxu1 %vm497_vm8, %v2345_v56 }
 0x2bd   :  { %v936_v59 = vpop.permute.xlu0 %935  ;;  %v1829_v60 = vpop.permute.xlu1 %1828  ;;  %1455 = vmatprep.mubr.f32.mxu1 %v1939_v10  ;;  %v939_v10 = vsel %vm182_vm2, %v1771_v62, %v1781_v18 }
 0x2be   :  { %v1830_v0 = vunpack.i.l.bf16 %v1829_v60  ;;  %v1831_v3 = vunpack.i.h.bf16 %v1829_v60  ;;  %v1606_v17 = vpack.c.bf16 %v939_v10, %v893_v5 }
 0x2c0   :  { %v894_v61 = vsel %vm135_vm1, %v1776_v14, %v1830_v0  ;;  %v896_v26 = vsel %vm135_vm1, %v1831_v3, %v890_v54  ;;  %v895_v44 = vsel %vm135_vm1, %v1830_v0, %v1831_v3 }
 0x2c1   :  { %v982_v1 = vpop.permute.xlu0 %981  ;;  %v1834_v4 = vpop.permute.xlu1 %1833 }
 0x2c2   :  { %v1835_v2 = vunpack.i.l.bf16 %v1834_v4  ;;  %v1836_v6 = vunpack.i.h.bf16 %v1834_v4 }
 0x2c4   :  { %v940_v62 = vsel %vm182_vm2, %v1781_v18, %v1835_v2  ;;  %v942_v27 = vsel %vm182_vm2, %v1836_v6, %v936_v59  ;;  %v941_v16 = vsel %vm182_vm2, %v1835_v2, %v1836_v6 }
 0x2c5   :  { %v1819_v8 = vpop.permute.xlu0 %1818  ;;  %v1839_v13 = vpop.permute.xlu1 %1838  ;;  %v1604_v37 = vpack.c.bf16 %v940_v62, %v894_v61  ;;  %v1620_v40 = vpack.c.bf16 %v942_v27, %v896_v26 }
 0x2c6   :  { %v1821_v51 = vunpack.i.h.bf16 %v1819_v8  ;;  %v1820_v19 = vunpack.i.l.bf16 %v1819_v8  ;;  %v1841_v43 = vunpack.i.h.bf16 %v1839_v13  ;;  %v1840_v50 = vunpack.i.l.bf16 %v1839_v13 }
 0x2c7   :  { %v1077_v13 = vsel %vm323_vm5, %v1806_v31, %v1816_v41 }
 0x2c8   :  { %v849_v20 = vsel %vm88_vm0, %v1820_v19, %v1821_v51  ;;  %v848_v21 = vsel %vm88_vm0, %v1761_v63, %v1820_v19  ;;  %v850_v23 = vsel %vm88_vm0, %v1821_v51, %v844_v52  ;;  %v1622_v52 = vpack.c.bf16 %v941_v16, %v895_v44 }
 0x2c9   :  { %v1618_v24 = vpack.c.bf16 %v849_v20, %v2204_v32  ;;  %v1028_v25 = vpop.permute.xlu0 %1027  ;;  %v1844_v9 = vpop.permute.xlu1 %1843  ;;  %v1600_v12 = vpack.c.bf16 %v848_v21, %v2183_v28  ;;  %v1616_v22 = vpack.c.bf16 %v850_v23, %v2207_v34  ;;  %v1031_v32 = vsel %vm276_vm4, %v1791_v15, %v1801_v58 }
 0x2ca   :  { %v1846_v33 = vunpack.i.h.bf16 %v1844_v9  ;;  %v1845_v7 = vunpack.i.l.bf16 %v1844_v9  ;;  %v986_v53 = vsel %vm229_vm3, %v1796_v49, %v1840_v50  ;;  %v988_v54 = vsel %vm229_vm3, %v1841_v43, %v982_v1 }
 0x2cb   :  { %1601 = vmatprep.subr.bf16.mxu0 %v1600_v12  ;;  %1617 = vmatprep.subr.bf16.mxu1 %v1616_v22  ;;  %v1610_v63 = vpack.c.bf16 %v1031_v32, %v985_v57  ;;  %v987_v14 = vsel %vm229_vm3, %v1840_v50, %v1841_v43  ;;  %v1124_v1 = vsel %vm370_vm6, %v1825_v36, %v1826_v42 }
 0x2cc   :  { %1603 = vmatpush1.bf16.msra.mxu0 %v1602_v48  ;;  %1619 = vmatpush1.bf16.msra.mxu1 %v1618_v24  ;;  %v1032_v28 = vsel %vm276_vm4, %v1801_v58, %v1845_v7  ;;  %v1034_v34 = vsel %vm276_vm4, %v1846_v33, %v1028_v25  ;;  %v1033_v46 = vsel %vm276_vm4, %v1845_v7, %v1846_v33 }
 0x2cd   :  { %v1074_v45 = vpop.permute.xlu0 %1073  ;;  %1605 = vmatprep.subr.bf16.mxu0 %v1604_v37  ;;  %1621 = vmatprep.subr.bf16.mxu1 %v1620_v40  ;;  %v1849_v11 = vpop.permute.xlu1 %1848  ;;  %v1608_v38 = vpack.c.bf16 %v1032_v28, %v986_v53  ;;  %v1624_v60 = vpack.c.bf16 %v1034_v34, %v988_v54  ;;  %v1626_v4 = vpack.c.bf16 %v1033_v46, %v987_v14 }
 0x2ce   :  { %v1850_v15 = vunpack.i.l.bf16 %v1849_v11  ;;  %v1851_v59 = vunpack.i.h.bf16 %v1849_v11  ;;  %v1123_v49 = vsel %vm370_vm6, %v1811_v35, %v1825_v36 }
 0x2cf   :  { %v1614_v35 = vpack.c.bf16 %v1123_v49, %v1077_v13 }
 0x2d0   :  { %1607 = vmatpush1.bf16.msra.mxu0 %v1606_v17  ;;  %1623 = vmatpush1.bf16.msra.mxu1 %v1622_v52  ;;  %v1078_v55 = vsel %vm323_vm5, %v1816_v41, %v1850_v15  ;;  %v1079_v0 = vsel %vm323_vm5, %v1850_v15, %v1851_v59  ;;  %v1080_v3 = vsel %vm323_vm5, %v1851_v59, %v1074_v45 }
 0x2d1   :  { %v1854_v18 = vpop.permute.xlu0 %1853  ;;  %1609 = vmatprep.subr.bf16.mxu0 %v1608_v38  ;;  %1625 = vmatprep.subr.bf16.mxu1 %v1624_v60  ;;  %v1160_v10 = vpop.permute.xlu1 %1159  ;;  %v1612_v2 = vpack.c.bf16 %v1124_v1, %v1078_v55 }
 0x2d2   :  { %v1856_v47 = vunpack.i.h.bf16 %v1854_v18  ;;  %v1855_v5 = vunpack.i.l.bf16 %v1854_v18  ;;  %v1169_v29 = vsel %vm417_vm7, %v2332_v39, %v1160_v10 }
 0x2d4   :  { %v1125_v6 = vsel %vm370_vm6, %v1826_v42, %v1855_v5  ;;  %1611 = vmatpush1.bf16.msra.mxu0 %v1610_v63  ;;  %1627 = vmatpush1.bf16.msra.mxu1 %v1626_v4  ;;  %v1126_v8 = vsel %vm370_vm6, %v1855_v5, %v1856_v47 }
 0x2d5   :  { %v1630_v48 = vpack.c.bf16 %v1125_v6, %v1079_v0  ;;  %v1162_v17 = vpop.permute.xlu0 %1161  ;;  %1613 = vmatprep.subr.bf16.mxu0 %v1612_v2  ;;  %v1628_v30 = vpack.c.bf16 %v1126_v8, %v1080_v3  ;;  %v1164_v51 = vpop.permute.xlu1 %1163 }
 0x2d6   :  { %v1170_v19 = vsel %vm417_vm7, %v1160_v10, %v1162_v17  ;;  %v1171_v31 = vsel %vm417_vm7, %v1162_v17, %v1164_v51 }
 0x2d7   :  { %1629 = vmatprep.subr.bf16.mxu1 %v1628_v30 }
 0x2d8   :  { %1615 = vmatpush1.bf16.msra.mxu0 %v1614_v35  ;;  %1631 = vmatpush1.bf16.msra.mxu1 %v1630_v48 }
 0x2d9   :  { %v1166_v57 = vpop.permute.xlu0 %1165  ;;  %1336 = vmatprep.subr.mxu0 %v1170_v19 }
 0x2da   :  { %v1172_v58 = vsel %vm417_vm7, %v1164_v51, %v1166_v57 }
 0x2db   :  { %1407 = vmatprep.subr.mxu1 %v1172_v58 }
 0x2dc   :  { %1337 = vmatpush1.msra.mxu0 %v1169_v29  ;;  %1408 = vmatpush1.msra.mxu1 %v1171_v31 }
 0x2dd   :  { %1534 = vmatmul.mubr.msk.f32.vlgmr.msra.gmra.mrb[4].mxu0 %vm497_vm8, %v2345_v56  ;;  %1535 = vmatmul.mubr.msk.f32.vlgmr.msra.gmra.mrb[4].mxu1 %vm497_vm8, %v2345_v56  ;;  %v1477_v61 = vpop.permute.xlu0 %1476 }
 0x2e1   :  { %v1481_v21 = vpop.permute.xlu0 %1480 }
 0x2e5   :  { %v1485_v26 = vpop.permute.xlu0 %1484 }
 0x2e6   :  { %v1244_v62 = vpop.permute.xlu1 %1243 }
 0x2e9   :  { %v1489_v50 = vpop.permute.xlu0 %1488 }
 0x2ea   :  { %v1479_v20 = vpop.permute.xlu1 %1478 }
 0x2eb   :  { %v1490_v27 = vsel %vm229_vm3, %v1477_v61, %v1479_v20  ;;  %v1491_v25 = vsel %vm229_vm3, %v1479_v20, %v1481_v21 }
 0x2ee   :  { %v1483_v43 = vpop.permute.xlu1 %1482 }
 0x2ef   :  { %v1492_v34 = vsel %vm229_vm3, %v1481_v21, %v1483_v43  ;;  %v1493_v44 = vsel %vm229_vm3, %v1483_v43, %v1485_v26 }
 0x2f2   :  { %v1487_v56 = vpop.permute.xlu1 %1486 }
 0x2f3   :  { %v1495_v28 = vsel %vm229_vm3, %v1487_v56, %v1489_v50  ;;  %v1494_v41 = vsel %vm229_vm3, %v1485_v26, %v1487_v56 }
 0x38f   :  { %v1315_v23 = vpop.f32.mrb[2].mxu1 }
 0x390   :  { %v1316_v24 = vadd.f32 %v1315_v23, %v1244_v62  ;;  %v1317_v39 = vpop.f32.mrb[3].mxu1 }
 0x391   :  { %v1318_v9 = vadd.f32 %v1317_v39, %v1244_v62 }
 0x392   :  { %v1502_v12 = vadd.f32 %v1490_v27, %v1316_v24 }
 0x393   :  { %v1503_v22 = vadd.f32 %v1491_v25, %v1318_v9 }
 0x394   :  { %1508 = vst [vmem:[#allocation9] sm:$0xff] %v1502_v12 }
 0x395   :  { %1509 = vst [vmem:[#allocation9 + $0x8] sm:$0xff] %v1503_v22 }
 0x3b0   :  { %v1386_v33 = vpop.f32.mrb[4].mxu0  ;;  %v1457_v7 = vpop.f32.mrb[4].mxu1 }
 0x3b1   :  { %v1387_v16 = vadd.f32 %v1386_v33, %v1244_v62  ;;  %v1458_v37 = vadd.f32 %v1457_v7, %v1244_v62  ;;  %v1388_v40 = vpop.f32.mrb[5].mxu0  ;;  %v1459_v32 = vpop.f32.mrb[5].mxu1 }
 0x3b2   :  { %v1389_v42 = vadd.f32 %v1388_v40, %v1244_v62  ;;  %v1460_v36 = vadd.f32 %v1459_v32, %v1244_v62 }
 0x3b3   :  { %v1504_v45 = vadd.f32 %v1492_v34, %v1387_v16  ;;  %v1506_v11 = vadd.f32 %v1494_v41, %v1458_v37 }
 0x3b4   :  { %v1505_v52 = vadd.f32 %v1493_v44, %v1389_v42  ;;  %v1507_v15 = vadd.f32 %v1495_v28, %v1460_v36 }
 0x3b5   :  { %1510 = vst [vmem:[#allocation9 + $0x10] sm:$0xff] %v1504_v45  ;;  %1512 = vst [vmem:[#allocation9 + $0x20] sm:$0xff] %v1506_v11 }
 0x3b6   :  { %1511 = vst [vmem:[#allocation9 + $0x18] sm:$0xff] %v1505_v52  ;;  %1513 = vst [vmem:[#allocation9 + $0x28] sm:$0xff] %v1507_v15 }
 0x3b7   :  { %1913 = shalt.err (!%p1910_p6)
}
 0x3b8   :  { %s1914_s13 = scalar_lea.hbm %s2439_s6, 768 }
 0x3b9   :  { %p1915_p7 = scmp.ne.s32.totalorder %s2439_s6, %s1914_s13  ;;  %p1918_p8 = scmp.lt.u32.totalorder %s1914_s13, %s2439_s6 }
 0x3bb   :  { %p1920_p9 = pnand %p1918_p8, %p1915_p7 }
 0x3bd   :  { %1923 = shalt.err (!%p1920_p9)
}
 0x3be   :  { %1523 = dma.vmem_to_hbm [thread:$0]  %s1521_s9, 768, %s2439_s6, [#allocation6]  }
 0x3bf   :  { %1928 = dma.done.wait [#allocation6], 768  }
 0x3c0   :  { %1929 = vsyncadd [#allocation6], 4294966528 }
 0x3c1   :  { %1527 = vsyncpa [#allocation5], 1 }
 0x3c2   :  { %1528 = vsyncpa [#allocation8], 1 }
 0x3c3   :  { %1529 = vsyncpa [#allocation6], 1 }

</bundles_post_ra>
